<compile_context>
chip_gen: v7x
topology: tpu7x:2x2x1
jax: 0.10.0
libtpu: 0.0.40
codegen_flags: <defaults>
</compile_context>

<pallas_src>
import functools

import jax
import jax.numpy as jnp
import numpy as np
from jax.experimental import pallas as pl
from jax.experimental.pallas import tpu as pltpu


def _round_up(x, m):
    return (x + m - 1) // m * m


def graphsage_kernel(adj_ref, h_aug_ref, h_self_ref, w_ref, out_ref, acc_ref, *, f_in):
    k = pl.program_id(1)

    @pl.when(k == 0)
    def _():
        acc_ref[...] = jnp.zeros_like(acc_ref)

    # Aggregation: adj_tile @ [h | 1 | 0]  ->  [:, :f_in] = neighbour sum,
    #                                          [:, f_in]  = in-degree.
    # adj is bf16 (exact 0/1); upcast so the accumulate stays f32-exact.
    acc_ref[...] += jnp.dot(adj_ref[...].astype(jnp.float32), h_aug_ref[...],
                            preferred_element_type=jnp.float32)

    @pl.when(k == pl.num_programs(1) - 1)
    def _():
        agg = acc_ref[...]                                   # (tm, f_in_pad)
        deg = agg[:, f_in:f_in + 1]                          # (tm, 1)
        # approx=False keeps full f32 accuracy; max(deg,1) guards padded /
        # zero-in-degree rows (real graph has self-loops, so deg >= 1).
        inv_deg = pl.reciprocal(jnp.maximum(deg, 1.0), approx=False)
        c_aug = agg * inv_deg                                # deg col -> ~1 (carries bias)

        # Fused epilogue matmul: [h_self | c_aug] @ [Ws ; Wn ; b ; 0]
        x = jnp.concatenate([h_self_ref[...], c_aug], axis=-1)      # (tm, 2*f_in_pad)
        z = jnp.dot(x, w_ref[...], preferred_element_type=jnp.float32)  # (tm, f_out_pad)

        # F.normalize(p=2, dim=1): x / max(||x||, 1e-12) == x * rsqrt(max(sumsq, 1e-24))
        sumsq = jnp.sum(z * z, axis=-1, keepdims=True)
        z = z * jax.lax.rsqrt(jnp.maximum(sumsq, 1e-24))

        out_ref[...] = jnp.maximum(z, 0.0)                   # relu


def graphsage_layer(adj, h, w, b, *, tm=256, tk=1024):
    """adj: (N, N) f32 (0/1, row v = in-neighbours of v), h: (N, F_in) f32,
    w: torch nn.Linear weight (F_out, 2*F_in), b: (F_out,)."""
    n, f_in = h.shape
    f_out = w.shape[0]

    f_in_pad = _round_up(f_in + 1, 128)        # room for the ones column, 128-lane dense
    f_out_pad = _round_up(f_out, 128)          # lane-dense output -> unmasked stores

    tm = min(tm, _round_up(n, 8))
    tk = min(tk, _round_up(n, 128))
    n_rows = _round_up(n, tm)                  # padded destination-node dim
    n_cols = _round_up(n, tk)                  # padded source-node (reduction) dim

    # Adjacency in bf16 (exact for 0/1) to halve HBM bytes of the big operand.
    adj_p = jnp.zeros((n_rows, n_cols), jnp.bfloat16)
    adj_p = adj_p.at[:n, :n].set(adj.astype(jnp.bfloat16))

    # h_aug = [h | 1 | 0...]: the ones column folds the degree sum into the matmul.
    h_aug = jnp.zeros((n_cols, f_in_pad), jnp.float32)
    h_aug = h_aug.at[:n, :f_in].set(h)
    h_aug = h_aug.at[:n, f_in].set(1.0)

    # Self features, tiled along the row axis for the epilogue.
    h_self = jnp.zeros((n_rows, f_in_pad), jnp.float32).at[:n, :f_in].set(h)

    # Fused weight: concat([h_self, c_aug]) @ w_full == h @ Ws + c @ Wn + 1 * b
    w_t = w.T                                                     # (2*F_in, F_out)
    w_full = jnp.zeros((2 * f_in_pad, f_out_pad), jnp.float32)
    w_full = w_full.at[:f_in, :f_out].set(w_t[:f_in])                       # self half
    w_full = w_full.at[f_in_pad:f_in_pad + f_in, :f_out].set(w_t[f_in:])    # neigh half
    w_full = w_full.at[f_in_pad + f_in, :f_out].set(b)                      # bias row

    grid = (n_rows // tm, n_cols // tk)
    kernel = functools.partial(graphsage_kernel, f_in=f_in)

    out = pl.pallas_call(
        kernel,
        out_shape=jax.ShapeDtypeStruct((n_rows, f_out_pad), jnp.float32),
        grid_spec=pltpu.PrefetchScalarGridSpec(
            num_scalar_prefetch=0,
            grid=grid,
            in_specs=[
                pl.BlockSpec((tm, tk), lambda i, k: (i, k)),            # adj tile
                pl.BlockSpec((tk, f_in_pad), lambda i, k: (k, 0)),      # h_aug k-slice
                pl.BlockSpec((tm, f_in_pad), lambda i, k: (i, 0)),      # h_self row-slice
                pl.BlockSpec((2 * f_in_pad, f_out_pad), lambda i, k: (0, 0)),  # fused W
            ],
            out_specs=pl.BlockSpec((tm, f_out_pad), lambda i, k: (i, 0)),
            scratch_shapes=[pltpu.VMEM((tm, f_in_pad), jnp.float32)],
        ),
        compiler_params=pltpu.CompilerParams(
            dimension_semantics=("parallel", "arbitrary")),
    )(adj_p, h_aug, h_self, w_full)

    return out[:n, :f_out]


def reference(adj, h, w, b):
    deg = jnp.sum(adj, axis=1, keepdims=True)
    c = (adj @ h) / deg
    z = jnp.concatenate([h, c], axis=1) @ w.T + b
    norm = jnp.sqrt(jnp.sum(z * z, axis=1, keepdims=True))
    z = z / jnp.maximum(norm, 1e-12)
    return jnp.maximum(z, 0.0)


if __name__ == "__main__":
    # TODO(synk): dropout treated as identity (eval mode); bn=False path;
    #             maxpool/lstm aggregators not implemented (mean only).
    N, F_IN, F_OUT = 64, 32, 32
    key = jax.random.PRNGKey(0)
    k_adj, k_h, k_w, k_b = jax.random.split(key, 4)

    # Random directed graph + self-loops (guarantees in-degree >= 1).
    adj = (jax.random.uniform(k_adj, (N, N)) < 0.2).astype(jnp.float32)
    adj = jnp.maximum(adj, jnp.eye(N, dtype=jnp.float32))

    h = jax.random.normal(k_h, (N, F_IN), dtype=jnp.float32)

    # nn.Linear(2*F_IN, F_OUT) weight with xavier_uniform_(gain=sqrt(2)) init.
    gain = float(np.sqrt(2.0))
    bound_w = gain * float(np.sqrt(6.0 / (2 * F_IN + F_OUT)))
    w = jax.random.uniform(k_w, (F_OUT, 2 * F_IN), minval=-bound_w, maxval=bound_w,
                           dtype=jnp.float32)
    bound_b = 1.0 / float(np.sqrt(2 * F_IN))
    b = jax.random.uniform(k_b, (F_OUT,), minval=-bound_b, maxval=bound_b,
                           dtype=jnp.float32)

    out = jax.block_until_ready(graphsage_layer(adj, h, w, b))
    ref = jax.block_until_ready(reference(adj, h, w, b))
    np.testing.assert_allclose(np.asarray(out), np.asarray(ref), rtol=1e-5, atol=1e-5)

    print("KERNEL_OK")
</pallas_src>

<mosaic_0001>
module attributes {stable_mosaic.version = 11 : i64} {
  func.func @graphsage_kernel(%arg0: i32, %arg1: i32, %arg2: memref<64x128xbf16, #tpu.memory_space<vmem>>, %arg3: memref<128x128xf32, #tpu.memory_space<vmem>>, %arg4: memref<64x128xf32, #tpu.memory_space<vmem>>, %arg5: memref<256x128xf32, #tpu.memory_space<vmem>>, %arg6: memref<64x128xf32, #tpu.memory_space<vmem>>, %arg7: memref<64x128xf32, #tpu.memory_space<vmem>>) attributes {dimension_semantics = [#tpu.dimension_semantics<parallel>, #tpu.dimension_semantics<arbitrary>], iteration_bounds = array<i64: 1, 1>, scalar_prefetch = 0 : i64, scratch_operands = 1 : i64, tpu.core_type = #tpu.core_type<tc>, window_params = [{transform_indices = @transform_0, window_bounds = array<i64: 64, 128>}, {transform_indices = @transform_1, window_bounds = array<i64: 128, 128>}, {transform_indices = @transform_2, window_bounds = array<i64: 64, 128>}, {pipeline_mode = #tpu.pipeline_mode<synchronous>, transform_indices = @transform_3, window_bounds = array<i64: 256, 128>}, {transform_indices = @transform_4, window_bounds = array<i64: 64, 128>}]} {
    %c0_i32 = arith.constant 0 : i32
    %0 = arith.cmpi eq, %arg1, %c0_i32 : i32
    %1 = arith.extui %0 : i1 to i32
    %c0_i32_0 = arith.constant 0 : i32
    %2 = arith.cmpi ne, %1, %c0_i32_0 : i32
    scf.if %2 {
      %cst_10 = arith.constant 0.000000e+00 : f32
      %13 = vector.broadcast %cst_10 : f32 to vector<64x128xf32>
      %c0_11 = arith.constant 0 : index
      %c0_12 = arith.constant 0 : index
      %14 = vector.load %arg7[%c0_11, %c0_12] : memref<64x128xf32, #tpu.memory_space<vmem>>, vector<64x128xf32>
      tpu.vector_store %arg7[%c0_11, %c0_12], %13 {strides = array<i32>} : memref<64x128xf32, #tpu.memory_space<vmem>>, vector<64x128xf32>,
    } else {
    }
    %c0 = arith.constant 0 : index
    %c0_1 = arith.constant 0 : index
    %3 = vector.load %arg7[%c0, %c0_1] : memref<64x128xf32, #tpu.memory_space<vmem>>, vector<64x128xf32>
    %c0_2 = arith.constant 0 : index
    %c0_3 = arith.constant 0 : index
    %4 = vector.load %arg2[%c0_2, %c0_3] : memref<64x128xbf16, #tpu.memory_space<vmem>>, vector<64x128xbf16>
    %5 = arith.extf %4 : vector<64x128xbf16> to vector<64x128xf32>
    %c0_4 = arith.constant 0 : index
    %c0_5 = arith.constant 0 : index
    %6 = vector.load %arg3[%c0_4, %c0_5] : memref<128x128xf32, #tpu.memory_space<vmem>>, vector<128x128xf32>
    %cst = arith.constant dense<0.000000e+00> : vector<64x128xf32>
    %7 = tpu.matmul %5, %6, %cst {dimension_numbers = #tpu.dot_dimension_numbers<[1], [0], [0], [1], [0, 0, 1, 1], [], []>} : vector<64x128xf32>, vector<128x128xf32>, vector<64x128xf32> -> vector<64x128xf32>
    %8 = arith.addf %3, %7 : vector<64x128xf32>
    %c0_6 = arith.constant 0 : index
    %c0_7 = arith.constant 0 : index
    %9 = vector.load %arg7[%c0_6, %c0_7] : memref<64x128xf32, #tpu.memory_space<vmem>>, vector<64x128xf32>
    tpu.vector_store %arg7[%c0_6, %c0_7], %8 {strides = array<i32>} : memref<64x128xf32, #tpu.memory_space<vmem>>, vector<64x128xf32>,
    %c0_i32_8 = arith.constant 0 : i32
    %10 = arith.cmpi eq, %arg1, %c0_i32_8 : i32
    %11 = arith.extui %10 : i1 to i32
    %c0_i32_9 = arith.constant 0 : i32
    %12 = arith.cmpi ne, %11, %c0_i32_9 : i32
    scf.if %12 {
      %c0_10 = arith.constant 0 : index
      %c0_11 = arith.constant 0 : index
      %13 = vector.load %arg7[%c0_10, %c0_11] : memref<64x128xf32, #tpu.memory_space<vmem>>, vector<64x128xf32>
      %14 = vector.extract_strided_slice %13 {offsets = [0, 32], sizes = [64, 1], strides = [1, 1]} : vector<64x128xf32> to vector<64x1xf32>
      %cst_12 = arith.constant 1.000000e+00 : f32
      %15 = vector.broadcast %cst_12 : f32 to vector<64x1xf32>
      %16 = arith.maximumf %14, %15 : vector<64x1xf32>
      %17 = tpu.reciprocal %16 : vector<64x1xf32> -> vector<64x1xf32>
      %18 = vector.broadcast %17 : vector<64x1xf32> to vector<64x128xf32>
      %19 = arith.mulf %13, %18 : vector<64x128xf32>
      %c0_13 = arith.constant 0 : index
      %c0_14 = arith.constant 0 : index
      %20 = vector.load %arg4[%c0_13, %c0_14] : memref<64x128xf32, #tpu.memory_space<vmem>>, vector<64x128xf32>
      %21 = tpu.concatenate %20, %19 in 1 : vector<64x128xf32>, vector<64x128xf32> -> vector<64x256xf32>
      %c0_15 = arith.constant 0 : index
      %c0_16 = arith.constant 0 : index
      %22 = vector.load %arg5[%c0_15, %c0_16] : memref<256x128xf32, #tpu.memory_space<vmem>>, vector<256x128xf32>
      %cst_17 = arith.constant dense<0.000000e+00> : vector<64x128xf32>
      %23 = tpu.matmul %21, %22, %cst_17 {dimension_numbers = #tpu.dot_dimension_numbers<[1], [0], [0], [1], [0, 0, 1, 1], [], []>} : vector<64x256xf32>, vector<256x128xf32>, vector<64x128xf32> -> vector<64x128xf32>
      %24 = arith.mulf %23, %23 : vector<64x128xf32>
      %cst_18 = arith.constant dense<0.000000e+00> : vector<64xf32>
      %25 = vector.multi_reduction <add>, %24, %cst_18 [1] : vector<64x128xf32> to vector<64xf32>
      %26 = vector.shape_cast %25 : vector<64xf32> to vector<64x1xf32>
      %cst_19 = arith.constant 1.000000e-24 : f32
      %27 = vector.broadcast %cst_19 : f32 to vector<64x1xf32>
      %28 = arith.maximumf %26, %27 : vector<64x1xf32>
      %29 = math.rsqrt %28 : vector<64x1xf32>
      %30 = vector.broadcast %29 : vector<64x1xf32> to vector<64x128xf32>
      %31 = arith.mulf %23, %30 : vector<64x128xf32>
      %cst_20 = arith.constant 0.000000e+00 : f32
      %32 = vector.broadcast %cst_20 : f32 to vector<64x128xf32>
      %33 = arith.maximumf %31, %32 : vector<64x128xf32>
      %c0_21 = arith.constant 0 : index
      %c0_22 = arith.constant 0 : index
      %34 = vector.load %arg6[%c0_21, %c0_22] : memref<64x128xf32, #tpu.memory_space<vmem>>, vector<64x128xf32>
      tpu.vector_store %arg6[%c0_21, %c0_22], %33 {strides = array<i32>} : memref<64x128xf32, #tpu.memory_space<vmem>>, vector<64x128xf32>,
    } else {
    }
    return
  }
  func.func @transform_0(%arg0: i32, %arg1: i32) -> (i32, i32) {
    %c0_i32 = arith.constant 0 : i32
    return %arg0, %arg1 : i32, i32
  }
  func.func @transform_1(%arg0: i32, %arg1: i32) -> (i32, i32) {
    %c0_i32 = arith.constant 0 : i32
    %c0_i32_0 = arith.constant 0 : i32
    return %arg1, %c0_i32 : i32, i32
  }
  func.func @transform_2(%arg0: i32, %arg1: i32) -> (i32, i32) {
    %c0_i32 = arith.constant 0 : i32
    %c0_i32_0 = arith.constant 0 : i32
    return %arg0, %c0_i32 : i32, i32
  }
  func.func @transform_3(%arg0: i32, %arg1: i32) -> (i32, i32) {
    %c0_i32 = arith.constant 0 : i32
    %c0_i32_0 = arith.constant 0 : i32
    %c0_i32_1 = arith.constant 0 : i32
    return %c0_i32, %c0_i32_0 : i32, i32
  }
  func.func @transform_4(%arg0: i32, %arg1: i32) -> (i32, i32) {
    %c0_i32 = arith.constant 0 : i32
    %c0_i32_0 = arith.constant 0 : i32
    return %arg0, %c0_i32 : i32, i32
  }
}

</mosaic_0001>

<bundles_post_ra>
// kernel: tpu_custom_call.1
= control target key start
LH: loop header
LB: loop body
LE: loop exit
PB: predicated region body
PF: predicated region fallthrough
CT: control target
= control target key end

     0   :  { %9 = vsyncpa [#allocation4], 0  ;;  %s1032_s0 = inlined_call_operand.hbm [shape: bf16[64,128], index: 0, kind: input, shape index: {}]   ;;  %s1033_s1 = inlined_call_operand.hbm [shape: f32[128,128], index: 1, kind: input, shape index: {}]   ;;  %s1034_s2 = inlined_call_operand.hbm [shape: f32[64,128], index: 2, kind: input, shape index: {}]   ;;  %s1035_s3 = inlined_call_operand.hbm [shape: f32[256,128], index: 3, kind: input, shape index: {}]   ;;  %s1036_s4 = inlined_call_operand.hbm [shape: f32[64,128], index: 4, kind: output, shape index: {}]  }
   0x1   :  { %10 = vsyncpa [#allocation7], 0 }
   0x2   :  { %11 = vsyncpa [#allocation10], 0 }
   0x3   :  { %12 = vsyncpa [#allocation5], 0  ;;  %s918_s15 = smov [#allocation6]   ;;  %s800_s19 = scalar_lea.hbm %s1033_s1, 2048 }
   0x4   :  { %s30_s16 = sshll.u32 %s918_s15, 4  ;;  %p801_p0 = scmp.ne.s32.totalorder %s1033_s1, %s800_s19  ;;  %s31_s16 = int_to_ptr.vmem [resolvable:$true] %s30_s16 }
   0x5   :  { %p804_p1 = scmp.lt.u32.totalorder %s800_s19, %s1033_s1 }
   0x7   :  { %p806_p2 = pnand %p804_p1, %p801_p0 }
   0x9   :  { %809 = shalt.err (!%p806_p2)
}
   0xa   :  { %s810_s24 = scalar_lea.vmem %s31_s16, 2048  ;;  %p815_p4 = scmp.lt.s32.totalorder %s31_s16, %s31_s16 }
   0xb   :  { %p811_p3 = scmp.ne.s32.totalorder %s31_s16, %s810_s24  ;;  %p816_p5 = scmp.lt.s32.totalorder %s810_s24, %s810_s24 }
   0xd   :  { %p817_p6 = por %p816_p5, %p815_p4 }
   0xf   :  { %p818_p7 = pnand %p817_p6, %p811_p3 }
  0x11   :  { %821 = shalt.err (!%p818_p7)
}
  0x12   :  { %s919_s25 = smov 128   ;;  %s920_s26 = smov 8  }
  0x13   :  { %36 = dma.hbm_to_vmem [thread:$0]  %s1033_s1, 2048, %s31_s16, [#allocation7], %s919_s25, %s919_s25, %s920_s26  }
  0x14   :  { %s921_s29 = smov [#allocation3]   ;;  %s822_s7 = scalar_lea.hbm %s1032_s0, 512 }
  0x15   :  { %s18_s30 = sshll.u32 %s921_s29, 4  ;;  %p823_p8 = scmp.ne.s32.totalorder %s1032_s0, %s822_s7  ;;  %s19_s30 = int_to_ptr.vmem [resolvable:$true] %s18_s30 }
  0x16   :  { %p826_p9 = scmp.lt.u32.totalorder %s822_s7, %s1032_s0 }
  0x18   :  { %p828_p10 = pnand %p826_p9, %p823_p8 }
  0x1a   :  { %831 = shalt.err (!%p828_p10)
}
  0x1b   :  { %s832_s12 = scalar_lea.vmem %s19_s30, 512  ;;  %p837_p12 = scmp.lt.s32.totalorder %s19_s30, %s19_s30 }
  0x1c   :  { %p833_p11 = scmp.ne.s32.totalorder %s19_s30, %s832_s12  ;;  %p838_p13 = scmp.lt.s32.totalorder %s832_s12, %s832_s12 }
  0x1e   :  { %p839_p0 = por %p838_p13, %p837_p12 }
  0x20   :  { %p840_p1 = pnand %p839_p0, %p833_p11 }
  0x22   :  { %843 = shalt.err (!%p840_p1)
}
  0x23   :  { %s922_s1 = smov 64   ;;  %s923_s13 = smov 4  }
  0x24   :  { %24 = dma.hbm_to_vmem [thread:$0]  %s1032_s0, 512, %s19_s30, [#allocation4], %s922_s1, %s922_s1, %s923_s13  }
  0x25   :  { %s924_s16 = smov [#allocation8]   ;;  %s925_s18 = smov [#allocation9]  }
  0x26   :  { %s42_s17 = sshll.u32 %s924_s16, 4  ;;  %s54_s19 = sshll.u32 %s925_s18, 4  ;;  %s43_s17 = int_to_ptr.vmem [resolvable:$true] %s42_s17  ;;  %s980_s19 = int_to_ptr.vmem [resolvable:$true] %s54_s19 }
  0x27   :  { %s844_s22 = scalar_lea.hbm %s1034_s2, 1024 }
  0x28   :  { %p845_p2 = scmp.ne.s32.totalorder %s1034_s2, %s844_s22  ;;  %p848_p3 = scmp.lt.u32.totalorder %s844_s22, %s1034_s2 }
  0x2a   :  { %p850_p4 = pnand %p848_p3, %p845_p2 }
  0x2c   :  { %853 = shalt.err (!%p850_p4)
}
  0x2d   :  { %s854_s0 = scalar_lea.vmem %s43_s17, 1024  ;;  %p859_p6 = scmp.lt.s32.totalorder %s43_s17, %s43_s17 }
  0x2e   :  { %p855_p5 = scmp.ne.s32.totalorder %s43_s17, %s854_s0  ;;  %p860_p7 = scmp.lt.s32.totalorder %s854_s0, %s854_s0 }
  0x30   :  { %p861_p8 = por %p860_p7, %p859_p6 }
  0x32   :  { %p862_p9 = pnand %p861_p8, %p855_p5 }
  0x34   :  { %865 = shalt.err (!%p862_p9)
}
  0x35   :  { %48 = dma.hbm_to_vmem [thread:$0]  %s1034_s2, 1024, %s43_s17, [#allocation7], %s919_s25, %s919_s25, %s920_s26  }
  0x36   :  { %s866_s7 = scalar_lea.hbm %s1035_s3, 4096 }
  0x37   :  { %p867_p10 = scmp.ne.s32.totalorder %s1035_s3, %s866_s7  ;;  %p870_p11 = scmp.lt.u32.totalorder %s866_s7, %s1035_s3 }
  0x39   :  { %p872_p12 = pnand %p870_p11, %p867_p10 }
  0x3b   :  { %875 = shalt.err (!%p872_p12)
}
  0x3c   :  { %s876_s12 = scalar_lea.vmem %s980_s19, 4096  ;;  %p881_p0 = scmp.lt.s32.totalorder %s980_s19, %s980_s19 }
  0x3d   :  { %p877_p13 = scmp.ne.s32.totalorder %s980_s19, %s876_s12  ;;  %p882_p1 = scmp.lt.s32.totalorder %s876_s12, %s876_s12 }
  0x3f   :  { %p883_p2 = por %p882_p1, %p881_p0 }
  0x41   :  { %p884_p3 = pnand %p883_p2, %p877_p13 }
  0x43   :  { %887 = shalt.err (!%p884_p3)
}
  0x44   :  { %60 = dma.hbm_to_vmem [thread:$0]  %s1035_s3, 4096, %s980_s19, [#allocation10], %s919_s25, %s919_s25, %s920_s26  }
  0x45   :  { %910 = dma.done.wait [#allocation4], 512  }
  0x46   :  { %911 = vsyncadd [#allocation4], 4294966784 }
  0x47   :  { %912 = dma.done.wait [#allocation7], 3072  }
  0x48   :  { %913 = vsyncadd [#allocation7], 4294964224 }
  0x49   :  { %914 = dma.done.wait [#allocation10], 4096  }
  0x4a   :  { %915 = vsyncadd [#allocation10], 4294963200  ;;  %v109_v0 = vld [vmem:[#allocation6] sm:$0xff]  ;;  %v110_v1 = vld [vmem:[#allocation6 + $0x8] sm:$0xff]  ;;  %v926_v36 = vmov 32   ;;  %s927_s3 = smov [#allocation11]  }
  0x4b   :  { %v111_v2 = vld [vmem:[#allocation6 + $0x10] sm:$0xff]  ;;  %v692_v3 = vpack.c.bf16 %v110_v1, %v109_v0  ;;  %v112_v4 = vld [vmem:[#allocation6 + $0x18] sm:$0xff]  ;;  %v113_v6 = vld [vmem:[#allocation6 + $0x20] sm:$0xff]  ;;  %766 = vset.pattern.permute.xlu0 %v926_v36  ;;  %767 = vset.pattern.permute.xlu1 %v926_v36  ;;  %s535_s13 = sshll.u32 %s927_s3, 4  ;;  %s536_s13 = int_to_ptr.vmem [resolvable:$true] %s535_s13 }
  0x4c   :  { %v696_v5 = vpack.c.bf16 %v112_v4, %v111_v2  ;;  %v114_v7 = vld [vmem:[#allocation6 + $0x28] sm:$0xff]  ;;  %v550_v9 = vld [vmem:[#allocation3] sm:$0xff]   ;;  %v115_v10 = vld [vmem:[#allocation6 + $0x30] sm:$0xff]  ;;  %s888_s14 = scalar_lea.vmem %s536_s13, 1024  ;;  %p893_p5 = scmp.lt.s32.totalorder %s536_s13, %s536_s13 }
  0x4d   :  { %693 = vmatprep.subr.bf16.mxu0 %v692_v3  ;;  %v700_v8 = vpack.c.bf16 %v114_v7, %v113_v6  ;;  %v116_v11 = vld [vmem:[#allocation6 + $0x38] sm:$0xff]  ;;  %v551_v12 = vunpack.c.l.bf16 %v550_v9  ;;  %v117_v14 = vld [vmem:[#allocation6 + $0x40] sm:$0xff]  ;;  %v118_v15 = vld [vmem:[#allocation6 + $0x48] sm:$0xff]  ;;  %v552_v27 = vunpack.c.h.bf16 %v550_v9  ;;  %p889_p4 = scmp.ne.s32.totalorder %s536_s13, %s888_s14  ;;  %p894_p6 = scmp.lt.s32.totalorder %s888_s14, %s888_s14 }
  0x4e   :  { %695 = vmatpush3.bf16.msra.mxu0 %v692_v3  ;;  %v704_v13 = vpack.c.bf16 %v116_v11, %v115_v10  ;;  %v708_v16 = vpack.c.bf16 %v118_v15, %v117_v14  ;;  %v119_v17 = vld [vmem:[#allocation6 + $0x50] sm:$0xff]  ;;  %v120_v18 = vld [vmem:[#allocation6 + $0x58] sm:$0xff]  ;;  %v121_v20 = vld [vmem:[#allocation6 + $0x60] sm:$0xff] }
  0x4f   :  { %697 = vmatprep.subr.bf16.mxu0 %v696_v5  ;;  %680 = vmatprep.mubr.f32.mxu0 %v551_v12  ;;  %v712_v19 = vpack.c.bf16 %v120_v18, %v119_v17  ;;  %v122_v21 = vld [vmem:[#allocation6 + $0x68] sm:$0xff]  ;;  %v123_v23 = vld [vmem:[#allocation6 + $0x70] sm:$0xff]  ;;  %v124_v24 = vld [vmem:[#allocation6 + $0x78] sm:$0xff]  ;;  %p895_p7 = por %p894_p6, %p893_p5 }
  0x50   :  { %v716_v22 = vpack.c.bf16 %v122_v21, %v121_v20  ;;  %v720_v25 = vpack.c.bf16 %v124_v24, %v123_v23  ;;  %v565_v26 = vld [vmem:[#allocation3 + $0x8] sm:$0xff]   ;;  %v566_v29 = vld [vmem:[#allocation3 + $0x10] sm:$0xff]   ;;  %v567_v32 = vld [vmem:[#allocation3 + $0x18] sm:$0xff]  }
  0x51   :  { %v555_v28 = vunpack.c.l.bf16 %v565_v26  ;;  %v556_v30 = vunpack.c.h.bf16 %v565_v26  ;;  %v559_v31 = vunpack.c.l.bf16 %v566_v29  ;;  %v560_v33 = vunpack.c.h.bf16 %v566_v29  ;;  %v345_v37 = vld [vmem:[#allocation9 + $0x80] sm:$0xff]  ;;  %v346_v38 = vld [vmem:[#allocation9 + $0x88] sm:$0xff]  ;;  %v347_v42 = vld [vmem:[#allocation9 + $0x90] sm:$0xff]  ;;  %p896_p8 = pnand %p895_p7, %p889_p4 }
  0x52   :  { %699 = vmatpush3.bf16.msra.mxu0 %v696_v5  ;;  %v563_v34 = vunpack.c.l.bf16 %v567_v32  ;;  %v564_v35 = vunpack.c.h.bf16 %v567_v32  ;;  %v329_v39 = vld [vmem:[#allocation9] sm:$0xff]  ;;  %v724_v40 = vpack.c.bf16 %v346_v38, %v345_v37  ;;  %v330_v41 = vld [vmem:[#allocation9 + $0x8] sm:$0xff]  ;;  %v348_v43 = vld [vmem:[#allocation9 + $0x98] sm:$0xff] }
  0x53   :  { %701 = vmatprep.subr.bf16.mxu0 %v700_v8  ;;  %v726_v44 = vpack.c.bf16 %v330_v41, %v329_v39  ;;  %v728_v45 = vpack.c.bf16 %v348_v43, %v347_v42  ;;  %v331_v46 = vld [vmem:[#allocation9 + $0x10] sm:$0xff]  ;;  %v332_v47 = vld [vmem:[#allocation9 + $0x18] sm:$0xff]  ;;  %v349_v48 = vld [vmem:[#allocation9 + $0xa0] sm:$0xff] }
  0x54   :  { %725 = vmatprep.subr.bf16.mxu1 %v724_v40  ;;  %v350_v49 = vld [vmem:[#allocation9 + $0xa8] sm:$0xff]  ;;  %v730_v50 = vpack.c.bf16 %v332_v47, %v331_v46  ;;  %v333_v52 = vld [vmem:[#allocation9 + $0x20] sm:$0xff]  ;;  %v351_v54 = vld [vmem:[#allocation9 + $0xb0] sm:$0xff] }
  0x55   :  { %727 = vmatpush3.bf16.msra.mxu1 %v726_v44  ;;  %v732_v51 = vpack.c.bf16 %v350_v49, %v349_v48  ;;  %v334_v53 = vld [vmem:[#allocation9 + $0x28] sm:$0xff]  ;;  %v352_v55 = vld [vmem:[#allocation9 + $0xb8] sm:$0xff]  ;;  %v335_v58 = vld [vmem:[#allocation9 + $0x30] sm:$0xff] }
  0x56   :  { %703 = vmatpush3.bf16.msra.mxu0 %v700_v8  ;;  %729 = vmatprep.subr.bf16.mxu1 %v728_v45  ;;  %v734_v56 = vpack.c.bf16 %v334_v53, %v333_v52  ;;  %v736_v57 = vpack.c.bf16 %v352_v55, %v351_v54  ;;  %v336_v59 = vld [vmem:[#allocation9 + $0x38] sm:$0xff]  ;;  %v353_v60 = vld [vmem:[#allocation9 + $0xc0] sm:$0xff]  ;;  %v354_v61 = vld [vmem:[#allocation9 + $0xc8] sm:$0xff] }
  0x57   :  { %705 = vmatprep.subr.bf16.mxu0 %v704_v13  ;;  %v738_v62 = vpack.c.bf16 %v336_v59, %v335_v58  ;;  %v740_v63 = vpack.c.bf16 %v354_v61, %v353_v60  ;;  %v337_v0 = vld [vmem:[#allocation9 + $0x40] sm:$0xff]  ;;  %v338_v1 = vld [vmem:[#allocation9 + $0x48] sm:$0xff]  ;;  %v355_v2 = vld [vmem:[#allocation9 + $0xd0] sm:$0xff] }
  0x58   :  { %v356_v3 = vld [vmem:[#allocation9 + $0xd8] sm:$0xff]  ;;  %v742_v4 = vpack.c.bf16 %v338_v1, %v337_v0  ;;  %v339_v6 = vld [vmem:[#allocation9 + $0x50] sm:$0xff]  ;;  %v357_v8 = vld [vmem:[#allocation9 + $0xe0] sm:$0xff] }
  0x59   :  { %731 = vmatpush3.bf16.msra.mxu1 %v730_v50  ;;  %v744_v5 = vpack.c.bf16 %v356_v3, %v355_v2  ;;  %v340_v7 = vld [vmem:[#allocation9 + $0x58] sm:$0xff]  ;;  %v358_v9 = vld [vmem:[#allocation9 + $0xe8] sm:$0xff]  ;;  %v341_v12 = vld [vmem:[#allocation9 + $0x60] sm:$0xff] }
  0x5a   :  { %707 = vmatpush3.bf16.msra.mxu0 %v704_v13  ;;  %733 = vmatprep.subr.bf16.mxu1 %v732_v51  ;;  %v746_v10 = vpack.c.bf16 %v340_v7, %v339_v6  ;;  %v748_v11 = vpack.c.bf16 %v358_v9, %v357_v8  ;;  %v342_v13 = vld [vmem:[#allocation9 + $0x68] sm:$0xff]  ;;  %v359_v14 = vld [vmem:[#allocation9 + $0xf0] sm:$0xff]  ;;  %v360_v15 = vld [vmem:[#allocation9 + $0xf8] sm:$0xff] }
  0x5b   :  { %709 = vmatprep.subr.bf16.mxu0 %v708_v16  ;;  %v752_v17 = vpack.c.bf16 %v360_v15, %v359_v14  ;;  %v344_v32 = vld [vmem:[#allocation9 + $0x78] sm:$0xff]  ;;  %v321_v47 = vld [vmem:[#allocation8] sm:$0xff]  ;;  %v322_v51 = vld [vmem:[#allocation8 + $0x8] sm:$0xff] }
  0x5c   :  { %v323_v54 = vld [vmem:[#allocation8 + $0x10] sm:$0xff]  ;;  %v325_v60 = vld [vmem:[#allocation8 + $0x20] sm:$0xff] }
  0x5d   :  { %735 = vmatpush3.bf16.msra.mxu1 %v734_v56  ;;  %v327_v2 = vld [vmem:[#allocation8 + $0x30] sm:$0xff] }
  0x5e   :  { %711 = vmatpush3.bf16.msra.mxu0 %v708_v16  ;;  %737 = vmatprep.subr.bf16.mxu1 %v736_v57  ;;  %v750_v16 = vpack.c.bf16 %v342_v13, %v341_v12  ;;  %v324_v57 = vld [vmem:[#allocation8 + $0x18] sm:$0xff] }
  0x5f   :  { %713 = vmatprep.subr.bf16.mxu0 %v712_v19 }
  0x61   :  { %739 = vmatpush3.bf16.msra.mxu1 %v738_v62 }
  0x62   :  { %715 = vmatpush3.bf16.msra.mxu0 %v712_v19  ;;  %741 = vmatprep.subr.bf16.mxu1 %v740_v63  ;;  %v326_v63 = vld [vmem:[#allocation8 + $0x28] sm:$0xff] }
  0x63   :  { %717 = vmatprep.subr.bf16.mxu0 %v716_v22 }
  0x65   :  { %743 = vmatpush3.bf16.msra.mxu1 %v742_v4  ;;  %v328_v4 = vld [vmem:[#allocation8 + $0x38] sm:$0xff] }
  0x66   :  { %719 = vmatpush3.bf16.msra.mxu0 %v716_v22  ;;  %745 = vmatprep.subr.bf16.mxu1 %v744_v5 }
  0x67   :  { %721 = vmatprep.subr.bf16.mxu0 %v720_v25 }
  0x69   :  { %747 = vmatpush3.bf16.msra.mxu1 %v746_v10 }
  0x6a   :  { %723 = vmatpush3.bf16.msra.mxu0 %v720_v25  ;;  %749 = vmatprep.subr.bf16.mxu1 %v748_v11 }
  0x6d   :  { %681 = vmatmul.mubr.f32.vlgmr.msra.gmra.mrb[0].mxu0 %v552_v27  ;;  %751 = vmatpush3.bf16.msra.mxu1 %v750_v16 }
  0x6e   :  { %683 = vmatprep.mubr.f32.mxu0 %v555_v28  ;;  %753 = vmatprep.subr.bf16.mxu1 %v752_v17 }
  0x71   :  { %684 = vmatmul.mubr.f32.gmra.mrb[2].mxu0 %v556_v30 }
  0x72   :  { %686 = vmatprep.mubr.f32.mxu0 %v559_v31  ;;  %v343_v31 = vld [vmem:[#allocation9 + $0x70] sm:$0xff] }
  0x75   :  { %687 = vmatmul.mubr.f32.gmra.mrb[4].mxu0 %v560_v33 }
  0x76   :  { %689 = vmatprep.mubr.f32.mxu0 %v563_v34  ;;  %v754_v34 = vpack.c.bf16 %v344_v32, %v343_v31 }
  0x78   :  { %755 = vmatpush3.bf16.msra.mxu1 %v754_v34 }
  0x79   :  { %690 = vmatmul.mubr.f32.gmra.mrb[6].mxu0 %v564_v35 }
 0x140   :  { %v682_v18 = vpop.f32.mrb[0].mxu0 }
 0x141   :  { %v191_v19 = vpop.f32.mrb[1].mxu0  ;;  %v258_v21 = vmax.f32 %v682_v18, 1.0 }
 0x142   :  { %v257_v20 = vmax.f32 %v191_v19, 1.0 }
 0x144   :  { %768 = vrcp.f32 %v257_v20  ;;  %v685_v22 = vpop.f32.mrb[2].mxu0 }
 0x145   :  { %v201_v23 = vpop.f32.mrb[3].mxu0  ;;  %v260_v24 = vmax.f32 %v685_v22, 1.0  ;;  %770 = vrcp.f32 %v258_v21 }
 0x146   :  { %v259_v25 = vmax.f32 %v201_v23, 1.0 }
 0x148   :  { %772 = vrcp.f32 %v259_v25  ;;  %v688_v26 = vpop.f32.mrb[4].mxu0 }
 0x149   :  { %v211_v27 = vpop.f32.mrb[5].mxu0  ;;  %774 = vrcp.f32 %v260_v24  ;;  %v262_v28 = vmax.f32 %v688_v26, 1.0 }
 0x14a   :  { %v261_v29 = vmax.f32 %v211_v27, 1.0 }
 0x14c   :  { %776 = vrcp.f32 %v261_v29  ;;  %v691_v30 = vpop.f32.mrb[6].mxu0 }
 0x14d   :  { %v221_v33 = vpop.f32.mrb[7].mxu0  ;;  %778 = vrcp.f32 %v262_v28  ;;  %v264_v36 = vmax.f32 %v691_v30, 1.0 }
 0x14e   :  { %v769_v35 = vpop.eup %768  ;;  %v263_v37 = vmax.f32 %v221_v33, 1.0 }
 0x14f   :  { %275 = vperm.xlu0 %766, %v769_v35   ;;  %v771_v38 = vpop.eup %770 }
 0x150   :  { %780 = vrcp.f32 %v263_v37 }
 0x151   :  { %782 = vrcp.f32 %v264_v36 }
 0x152   :  { %v773_v39 = vpop.eup %772 }
 0x153   :  { %280 = vperm.xlu0 %766, %v771_v38   ;;  %285 = vperm.xlu1 %767, %v773_v39   ;;  %v775_v40 = vpop.eup %774 }
 0x156   :  { %v777_v41 = vpop.eup %776 }
 0x157   :  { %290 = vperm.xlu1 %767, %v775_v40   ;;  %295 = vperm.xlu0 %766, %v777_v41   ;;  %v779_v42 = vpop.eup %778 }
 0x15a   :  { %v781_v43 = vpop.eup %780 }
 0x15b   :  { %300 = vperm.xlu1 %767, %v779_v42   ;;  %305 = vperm.xlu0 %766, %v781_v43   ;;  %v783_v44 = vpop.eup %782 }
 0x15f   :  { %310 = vperm.xlu1 %767, %v783_v44  }
 0x1ce   :  { %v276_v45 = vpop.permute.xlu0 %275 }
 0x1cf   :  { %v313_v46 = vmul.f32 %v276_v45, %v191_v19 }
 0x1d1   :  { %425 = vmatprep.mubr.f32.mxu1 %v313_v46 }
 0x1d2   :  { %426 = vmatmul.mubr.f32.vlgmr.msra.gmra.mrb[0].mxu1 %v321_v47  ;;  %v281_v48 = vpop.permute.xlu0 %280  ;;  %v286_v49 = vpop.permute.xlu1 %285 }
 0x1d3   :  { %v314_v50 = vmul.f32 %v682_v18, %v281_v48  ;;  %v315_v52 = vmul.f32 %v286_v49, %v201_v23 }
 0x1d5   :  { %430 = vmatprep.mubr.f32.mxu1 %v314_v50 }
 0x1d6   :  { %431 = vmatmul.mubr.f32.gmra.mrb[2].mxu1 %v322_v51  ;;  %v291_v53 = vpop.permute.xlu1 %290  ;;  %v296_v56 = vpop.permute.xlu0 %295 }
 0x1d7   :  { %435 = vmatprep.mubr.f32.mxu1 %v315_v52  ;;  %v316_v55 = vmul.f32 %v685_v22, %v291_v53  ;;  %v317_v58 = vmul.f32 %v296_v56, %v211_v27 }
 0x1da   :  { %436 = vmatmul.mubr.f32.gmra.mrb[4].mxu1 %v323_v54  ;;  %v301_v59 = vpop.permute.xlu1 %300  ;;  %v306_v62 = vpop.permute.xlu0 %305 }
 0x1db   :  { %440 = vmatprep.mubr.f32.mxu1 %v316_v55  ;;  %v318_v61 = vmul.f32 %v688_v26, %v301_v59  ;;  %v319_v0 = vmul.f32 %v306_v62, %v221_v33 }
 0x1de   :  { %441 = vmatmul.mubr.f32.gmra.mrb[6].mxu1 %v324_v57  ;;  %v311_v1 = vpop.permute.xlu1 %310 }
 0x1df   :  { %445 = vmatprep.mubr.f32.mxu1 %v317_v58  ;;  %v320_v3 = vmul.f32 %v691_v30, %v311_v1 }
 0x1e2   :  { %446 = vmatmul.mubr.f32.gmra.mrb[8].mxu1 %v325_v60 }
 0x1e3   :  { %450 = vmatprep.mubr.f32.mxu1 %v318_v61 }
 0x1e6   :  { %451 = vmatmul.mubr.f32.gmra.mrb[10].mxu1 %v326_v63 }
 0x1e7   :  { %455 = vmatprep.mubr.f32.mxu1 %v319_v0 }
 0x1ea   :  { %456 = vmatmul.mubr.f32.gmra.mrb[12].mxu1 %v327_v2 }
 0x1eb   :  { %460 = vmatprep.mubr.f32.mxu1 %v320_v3 }
 0x1ee   :  { %461 = vmatmul.mubr.f32.gmra.mrb[14].mxu1 %v328_v4 }
 0x2a5   :  { %v624_v5 = vpop.f32.mrb[0].mxu1 }
 0x2a6   :  { %v625_v6 = vpop.f32.mrb[1].mxu1 }
 0x2a7   :  { %v626_v7 = vadd.f32 %v625_v6, %v624_v5 }
 0x2a9   :  { %v627_v8 = vpop.f32.mrb[2].mxu1  ;;  %v466_v9 = vmul.f32 %v626_v7, %v626_v7 }
 0x2aa   :  { %v628_v10 = vpop.f32.mrb[3].mxu1 }
 0x2ab   :  { %v629_v11 = vadd.f32 %v628_v10, %v627_v8  ;;  %474 = vadd.xlane.f32.xlu0 %v466_v9 }
 0x2ad   :  { %v630_v12 = vpop.f32.mrb[4].mxu1  ;;  %v467_v13 = vmul.f32 %v629_v11, %v629_v11 }
 0x2ae   :  { %v631_v14 = vpop.f32.mrb[5].mxu1 }
 0x2af   :  { %v632_v15 = vadd.f32 %v631_v14, %v630_v12  ;;  %476 = vadd.xlane.f32.xlu1 %v467_v13 }
 0x2b1   :  { %v633_v16 = vpop.f32.mrb[6].mxu1  ;;  %v468_v17 = vmul.f32 %v632_v15, %v632_v15 }
 0x2b2   :  { %v634_v18 = vpop.f32.mrb[7].mxu1 }
 0x2b3   :  { %v635_v19 = vadd.f32 %v634_v18, %v633_v16  ;;  %478 = vadd.xlane.f32.xlu0 %v468_v17 }
 0x2b5   :  { %v636_v20 = vpop.f32.mrb[8].mxu1  ;;  %v469_v21 = vmul.f32 %v635_v19, %v635_v19 }
 0x2b6   :  { %v637_v22 = vpop.f32.mrb[9].mxu1 }
 0x2b7   :  { %v638_v23 = vadd.f32 %v637_v22, %v636_v20  ;;  %480 = vadd.xlane.f32.xlu0 %v469_v21 }
 0x2b9   :  { %v639_v24 = vpop.f32.mrb[10].mxu1  ;;  %v470_v25 = vmul.f32 %v638_v23, %v638_v23 }
 0x2ba   :  { %v640_v26 = vpop.f32.mrb[11].mxu1 }
 0x2bb   :  { %v641_v27 = vadd.f32 %v640_v26, %v639_v24  ;;  %482 = vadd.xlane.f32.xlu1 %v470_v25 }
 0x2bd   :  { %v642_v28 = vpop.f32.mrb[12].mxu1  ;;  %v471_v29 = vmul.f32 %v641_v27, %v641_v27 }
 0x2be   :  { %v643_v30 = vpop.f32.mrb[13].mxu1 }
 0x2bf   :  { %v644_v31 = vadd.f32 %v643_v30, %v642_v28  ;;  %484 = vadd.xlane.f32.xlu0 %v471_v29 }
 0x2c1   :  { %v645_v32 = vpop.f32.mrb[14].mxu1  ;;  %v472_v33 = vmul.f32 %v644_v31, %v644_v31 }
 0x2c2   :  { %v646_v34 = vpop.f32.mrb[15].mxu1 }
 0x2c3   :  { %v647_v35 = vadd.f32 %v646_v34, %v645_v32  ;;  %486 = vadd.xlane.f32.xlu1 %v472_v33 }
 0x2c5   :  { %v473_v36 = vmul.f32 %v647_v35, %v647_v35 }
 0x2c7   :  { %488 = vadd.xlane.f32.xlu0 %v473_v36 }
 0x338   :  { %v475_v37 = vpop.xlane.xlu0 %474 }
 0x339   :  { %v490_v38 = vmax.f32 %v475_v37, 1e-24 }
 0x33b   :  { %784 = vrsqrt.f32 %v490_v38 }
 0x33c   :  { %v477_v39 = vpop.xlane.xlu1 %476 }
 0x33d   :  { %v491_v40 = vmax.f32 %v477_v39, 1e-24 }
 0x33f   :  { %786 = vrsqrt.f32 %v491_v40 }
 0x340   :  { %v479_v41 = vpop.xlane.xlu0 %478 }
 0x341   :  { %v492_v42 = vmax.f32 %v479_v41, 1e-24 }
 0x343   :  { %788 = vrsqrt.f32 %v492_v42 }
 0x344   :  { %v481_v43 = vpop.xlane.xlu0 %480 }
 0x345   :  { %v785_v44 = vpop.eup %784  ;;  %v493_v45 = vmax.f32 %v481_v43, 1e-24 }
 0x346   :  { %v506_v46 = vmul.f32 %v785_v44, %v626_v7 }
 0x347   :  { %790 = vrsqrt.f32 %v493_v45 }
 0x348   :  { %v514_v47 = vmax.f32 %v506_v46, 0.0  ;;  %v483_v48 = vpop.xlane.xlu1 %482 }
 0x349   :  { %v787_v49 = vpop.eup %786  ;;  %v494_v50 = vmax.f32 %v483_v48, 1e-24 }
 0x34a   :  { %522 = vst [vmem:[#allocation11] sm:$0xff] %v514_v47  ;;  %v507_v51 = vmul.f32 %v787_v49, %v629_v11 }
 0x34b   :  { %792 = vrsqrt.f32 %v494_v50 }
 0x34c   :  { %v515_v52 = vmax.f32 %v507_v51, 0.0  ;;  %v485_v53 = vpop.xlane.xlu0 %484 }
 0x34d   :  { %v789_v54 = vpop.eup %788  ;;  %v495_v55 = vmax.f32 %v485_v53, 1e-24 }
 0x34e   :  { %523 = vst [vmem:[#allocation11 + $0x8] sm:$0xff] %v515_v52  ;;  %v508_v56 = vmul.f32 %v789_v54, %v632_v15 }
 0x34f   :  { %794 = vrsqrt.f32 %v495_v55 }
 0x350   :  { %v516_v57 = vmax.f32 %v508_v56, 0.0  ;;  %v487_v58 = vpop.xlane.xlu1 %486 }
 0x351   :  { %v791_v59 = vpop.eup %790  ;;  %v496_v60 = vmax.f32 %v487_v58, 1e-24 }
 0x352   :  { %524 = vst [vmem:[#allocation11 + $0x10] sm:$0xff] %v516_v57  ;;  %v509_v61 = vmul.f32 %v791_v59, %v635_v19 }
 0x353   :  { %796 = vrsqrt.f32 %v496_v60 }
 0x354   :  { %v517_v62 = vmax.f32 %v509_v61, 0.0  ;;  %v489_v63 = vpop.xlane.xlu0 %488 }
 0x355   :  { %v793_v0 = vpop.eup %792  ;;  %v497_v1 = vmax.f32 %v489_v63, 1e-24 }
 0x356   :  { %525 = vst [vmem:[#allocation11 + $0x18] sm:$0xff] %v517_v62  ;;  %v510_v2 = vmul.f32 %v793_v0, %v638_v23 }
 0x357   :  { %798 = vrsqrt.f32 %v497_v1 }
 0x358   :  { %v518_v3 = vmax.f32 %v510_v2, 0.0 }
 0x359   :  { %v795_v4 = vpop.eup %794 }
 0x35a   :  { %526 = vst [vmem:[#allocation11 + $0x20] sm:$0xff] %v518_v3  ;;  %v511_v5 = vmul.f32 %v795_v4, %v641_v27 }
 0x35c   :  { %v519_v6 = vmax.f32 %v511_v5, 0.0 }
 0x35d   :  { %v797_v7 = vpop.eup %796 }
 0x35e   :  { %527 = vst [vmem:[#allocation11 + $0x28] sm:$0xff] %v519_v6  ;;  %v512_v8 = vmul.f32 %v797_v7, %v644_v31 }
 0x360   :  { %v520_v9 = vmax.f32 %v512_v8, 0.0 }
 0x361   :  { %v799_v10 = vpop.eup %798 }
 0x362   :  { %528 = vst [vmem:[#allocation11 + $0x30] sm:$0xff] %v520_v9  ;;  %v513_v11 = vmul.f32 %v799_v10, %v647_v35 }
 0x364   :  { %v521_v12 = vmax.f32 %v513_v11, 0.0 }
 0x366   :  { %529 = vst [vmem:[#allocation11 + $0x38] sm:$0xff] %v521_v12 }
 0x367   :  { %899 = shalt.err (!%p896_p8)
}
 0x368   :  { %s900_s17 = scalar_lea.hbm %s1036_s4, 1024 }
 0x369   :  { %p901_p9 = scmp.ne.s32.totalorder %s1036_s4, %s900_s17  ;;  %p904_p10 = scmp.lt.u32.totalorder %s900_s17, %s1036_s4 }
 0x36b   :  { %p906_p11 = pnand %p904_p10, %p901_p9 }
 0x36d   :  { %909 = shalt.err (!%p906_p11)
}
 0x36e   :  { %541 = dma.vmem_to_hbm [thread:$0]  %s536_s13, 1024, %s1036_s4, [#allocation5], %s919_s25, %s919_s25, %s920_s26  }
 0x36f   :  { %916 = dma.done.wait [#allocation5], 1024  }
 0x370   :  { %917 = vsyncadd [#allocation5], 4294966272 }
 0x371   :  { %545 = vsyncpa [#allocation4], 1 }
 0x372   :  { %546 = vsyncpa [#allocation7], 1 }
 0x373   :  { %547 = vsyncpa [#allocation10], 1 }
 0x374   :  { %548 = vsyncpa [#allocation5], 1 }

</bundles_post_ra>
